<compile_context>
chip_gen: v5e
topology: v5e:2x2
jax: 0.10.0
libtpu: 0.0.40
codegen_flags: <defaults>
</compile_context>

<pallas_src>
import functools

import jax
import jax.numpy as jnp
from jax.experimental import pallas as pl
from jax.experimental.pallas import tpu as pltpu


# ----------------------------------------------------------------------------
# Normalized adjacency (built once, cached across calls = GCNConv cached=True)
# ----------------------------------------------------------------------------
def _round_up(v, m):
    return ((v + m - 1) // m) * m


def gcn_norm_adjacency(edge_index, num_nodes, n_pad):
    """Dense symmetrically-normalized adjacency, padded to (n_pad, n_pad) bf16.

    Matches PyG gcn_norm: one self-loop per node is added (existing self-loops
    are replaced, not double counted); duplicate non-self-loop edges accumulate.
    Built with a single O(E) scatter of pre-scaled weights — no dense f32 passes.
    """
    src, dst = edge_index[0], edge_index[1]
    not_loop = (src != dst).astype(jnp.float32)

    # deg[i] = 1 (self-loop) + #non-self-loop edges with target i
    deg = jnp.ones((num_nodes,), jnp.float32).at[dst].add(not_loop)
    dinv = jax.lax.rsqrt(deg)  # deg >= 1 always, so finite

    a = jnp.zeros((n_pad, n_pad), jnp.bfloat16)
    w_edge = (dinv[dst] * dinv[src] * not_loop).astype(jnp.bfloat16)
    a = a.at[dst, src].add(w_edge)                       # off-diagonal edges
    idx = jnp.arange(num_nodes)
    a = a.at[idx, idx].add((dinv * dinv).astype(jnp.bfloat16))  # self-loops
    return a


# ----------------------------------------------------------------------------
# Fused GCN layer kernel:  O = act( A_hat @ (F @ W) + bias )
#   grid = (row tiles, K-reduction tiles); F@W computed per K-block on the MXU
#   (W resident in VMEM); f32 VMEM accumulator; bias/act in the finalize.
# ----------------------------------------------------------------------------
def _gcn_layer_kernel(a_ref, f_ref, w_ref, b_ref, o_ref, acc_ref, *, relu):
    k = pl.program_id(1)

    @pl.when(k == 0)
    def _():
        acc_ref[...] = jnp.zeros_like(acc_ref)

    # Feature transform for this K-block: (tk, F) @ (F, C), then aggregate with
    # the (tm, tk) adjacency tile.  Both matmuls stream bf16 through the MXU
    # with f32 accumulation.
    fw = jnp.dot(f_ref[...], w_ref[...], preferred_element_type=jnp.float32)
    acc_ref[...] += jnp.dot(
        a_ref[...], fw.astype(jnp.bfloat16), preferred_element_type=jnp.float32
    )

    @pl.when(k == pl.num_programs(1) - 1)
    def _():
        out = acc_ref[...] + b_ref[...]
        if relu:
            out = jnp.maximum(out, 0.0)
        o_ref[...] = out.astype(o_ref.dtype)


def _gcn_layer(a_p, f_p, w_p, b_p, *, relu, out_dtype, tm, tk):
    n_pad = a_p.shape[0]
    fdim = f_p.shape[1]
    c = w_p.shape[1]
    out_bytes = jnp.dtype(out_dtype).itemsize

    # Explicit VMEM budget: double-buffered A, F, W, output + f32 accumulator.
    budget = (
        2 * tm * tk * 2        # A tiles (bf16, double buffered)
        + 2 * tk * fdim * 2    # F tiles
        + 2 * fdim * c * 2     # resident W
        + 2 * tm * c * out_bytes
        + tm * c * 4           # f32 accumulator
        + 2 * c * 4            # bias
    )
    vmem_limit = min(max(int(budget * 1.5), 32 << 20), 48 << 20)

    return pl.pallas_call(
        functools.partial(_gcn_layer_kernel, relu=relu),
        out_shape=jax.ShapeDtypeStruct((n_pad, c), out_dtype),
        grid_spec=pltpu.PrefetchScalarGridSpec(
            num_scalar_prefetch=0,
            grid=(n_pad // tm, n_pad // tk),
            in_specs=[
                pl.BlockSpec((tm, tk), lambda i, k: (i, k)),    # A_hat tile
                pl.BlockSpec((tk, fdim), lambda i, k: (k, 0)),  # feature K-block
                pl.BlockSpec((fdim, c), lambda i, k: (0, 0)),   # weight (resident)
                pl.BlockSpec((1, c), lambda i, k: (0, 0)),      # bias
            ],
            out_specs=pl.BlockSpec((tm, c), lambda i, k: (i, 0)),
            scratch_shapes=[pltpu.VMEM((tm, c), jnp.float32)],
        ),
        compiler_params=pltpu.CompilerParams(
            dimension_semantics=("parallel", "arbitrary"),
            vmem_limit_bytes=vmem_limit,
        ),
    )(a_p, f_p, w_p, b_p)


# ----------------------------------------------------------------------------
# Wrapper: VariationalGCNEncoder forward
# ----------------------------------------------------------------------------
def _pad2(x, rows, cols, dtype):
    out = jnp.zeros((rows, cols), dtype)
    return out.at[: x.shape[0], : x.shape[1]].set(x.astype(dtype))


def _pick_tiles(n_pad):
    def best(cands, limit):
        for t in cands:
            if t <= limit and n_pad % t == 0:
                return t
        return n_pad

    # Large row tile cuts re-streaming of the feature operand, but leave >= 2
    # row tiles when possible so v7x's two TensorCores both get work.
    tm_limit = n_pad // 2 if n_pad >= 256 else n_pad
    tm = best((2048, 1024, 512, 256, 128), tm_limit)
    tk = best((512, 256, 128), n_pad)
    return tm, tk


def variational_gcn_encoder(x, edge_index, params, *, a_hat_padded=None):
    """x: [N, Fin] f32; edge_index: [2, E] int32.  Returns (mu, logstd) [N, out].

    Pass `a_hat_padded` (from gcn_norm_adjacency) to reuse the cached normalized
    adjacency across calls (the GCNConv cached=True analogue).
    """
    n, fin = x.shape
    hidden = params["w1"].shape[1]
    out_ch = params["w_mu"].shape[1]
    fused = 2 * out_ch

    n_pad = _round_up(n, 128)
    fin_pad = _round_up(fin, 128)
    hid_pad = _round_up(hidden, 128)
    fused_pad = _round_up(fused, 128)

    if a_hat_padded is None:
        a_hat_padded = gcn_norm_adjacency(edge_index, n, n_pad)

    # Lane-dense, zero-padded operands (bf16 streaming, f32 biases).
    x_p = _pad2(x, n_pad, fin_pad, jnp.bfloat16)
    w1_p = _pad2(params["w1"], fin_pad, hid_pad, jnp.bfloat16)
    b1_p = _pad2(params["b1"].reshape(1, -1), 1, hid_pad, jnp.float32)

    w_heads = jnp.concatenate([params["w_mu"], params["w_logstd"]], axis=1)
    b_heads = jnp.concatenate(
        [params["b_mu"].reshape(1, -1), params["b_logstd"].reshape(1, -1)], axis=1
    )
    wh_p = _pad2(w_heads, hid_pad, fused_pad, jnp.bfloat16)
    bh_p = _pad2(b_heads, 1, fused_pad, jnp.float32)

    tm, tk = _pick_tiles(n_pad)

    # Layer 1 (fused): H = relu(A_hat @ (X @ W1) + b1)
    h = _gcn_layer(a_hat_padded, x_p, w1_p, b1_p,
                   relu=True, out_dtype=jnp.bfloat16, tm=tm, tk=tk)
    # Fused heads:     Z = A_hat @ (H @ [W_mu | W_logstd]) + [b_mu | b_logstd]
    z = _gcn_layer(a_hat_padded, h, wh_p, bh_p,
                   relu=False, out_dtype=jnp.float32, tm=tm, tk=tk)

    mu = z[:n, :out_ch]
    logstd = z[:n, out_ch:fused]
    return mu, logstd


# ----------------------------------------------------------------------------
# Parameter init (matches conv1 / conv_mu / conv_logstd of the module)
# ----------------------------------------------------------------------------
def init_params(key, in_channels, out_channels):
    hidden = 2 * out_channels
    k1, k2, k3 = jax.random.split(key, 3)

    def glorot(k, shape):
        limit = jnp.sqrt(6.0 / (shape[0] + shape[1]))
        return jax.random.uniform(k, shape, jnp.float32, -limit, limit)

    return {
        "w1": glorot(k1, (in_channels, hidden)),
        "b1": jnp.zeros((1, hidden), jnp.float32),
        "w_mu": glorot(k2, (hidden, out_channels)),
        "b_mu": jnp.zeros((1, out_channels), jnp.float32),
        "w_logstd": glorot(k3, (hidden, out_channels)),
        "b_logstd": jnp.zeros((1, out_channels), jnp.float32),
    }


if __name__ == "__main__":
    # Small shapes consistent with the module: PCA-reduced features (n_components=10),
    # out_channels=48, hidden = 2*48 = 96.
    N = 64
    IN_CHANNELS = 10
    OUT_CHANNELS = 48
    E = 128  # directed edges before symmetrization

    key = jax.random.PRNGKey(0)
    kx, ke, kp = jax.random.split(key, 3)

    x = jax.random.normal(kx, (N, IN_CHANNELS), jnp.float32)

    src = jax.random.randint(ke, (E,), 0, N, jnp.int32)
    dst = jax.random.randint(jax.random.fold_in(ke, 1), (E,), 0, N, jnp.int32)
    edge_index = jnp.stack(
        [jnp.concatenate([src, dst]), jnp.concatenate([dst, src])], axis=0
    )

    params = init_params(kp, IN_CHANNELS, OUT_CHANNELS)

    # cached=True analogue: build the normalized adjacency once, reuse across calls.
    n_pad = _round_up(N, 128)
    a_hat = gcn_norm_adjacency(edge_index, N, n_pad)

    fwd = jax.jit(
        lambda xx, aa, pp: variational_gcn_encoder(xx, None, pp, a_hat_padded=aa)
    )
    mu, logstd = fwd(x, a_hat, params)
    jax.block_until_ready((mu, logstd))

    # Pure-JAX reference (same quantized adjacency, f32 weights) — loose tolerance
    # for the bf16 streaming path.
    a_ref = a_hat[:N, :N].astype(jnp.float32)
    h_ref = jax.nn.relu(a_ref @ (x @ params["w1"]) + params["b1"])
    mu_ref = a_ref @ (h_ref @ params["w_mu"]) + params["b_mu"]
    ls_ref = a_ref @ (h_ref @ params["w_logstd"]) + params["b_logstd"]

    assert mu.shape == (N, OUT_CHANNELS) and logstd.shape == (N, OUT_CHANNELS)
    assert bool(jnp.all(jnp.isfinite(mu))) and bool(jnp.all(jnp.isfinite(logstd)))
    assert bool(jnp.allclose(mu, mu_ref, atol=5e-2, rtol=5e-2))
    assert bool(jnp.allclose(logstd, ls_ref, atol=5e-2, rtol=5e-2))
    print("KERNEL_OK")
</pallas_src>

<mosaic_0001>
module attributes {stable_mosaic.version = 11 : i64} {
  func.func @_gcn_layer_kernel(%arg0: i32, %arg1: i32, %arg2: memref<128x128xbf16, #tpu.memory_space<vmem>>, %arg3: memref<128x128xbf16, #tpu.memory_space<vmem>>, %arg4: memref<128x128xbf16, #tpu.memory_space<vmem>>, %arg5: memref<1x128xf32, #tpu.memory_space<vmem>>, %arg6: memref<128x128xf32, #tpu.memory_space<vmem>>, %arg7: memref<128x128xf32, #tpu.memory_space<vmem>>) attributes {dimension_semantics = [#tpu.dimension_semantics<parallel>, #tpu.dimension_semantics<arbitrary>], iteration_bounds = array<i64: 1, 1>, scalar_prefetch = 0 : i64, scratch_operands = 1 : i64, tpu.core_type = #tpu.core_type<tc>, window_params = [{transform_indices = @transform_0, window_bounds = array<i64: 128, 128>}, {transform_indices = @transform_1, window_bounds = array<i64: 128, 128>}, {pipeline_mode = #tpu.pipeline_mode<synchronous>, transform_indices = @transform_2, window_bounds = array<i64: 128, 128>}, {pipeline_mode = #tpu.pipeline_mode<synchronous>, transform_indices = @transform_3, window_bounds = array<i64: 1, 128>}, {transform_indices = @transform_4, window_bounds = array<i64: 128, 128>}]} {
    %c0_i32 = arith.constant 0 : i32
    %0 = arith.cmpi eq, %arg1, %c0_i32 : i32
    %1 = arith.extui %0 : i1 to i32
    %c0_i32_0 = arith.constant 0 : i32
    %2 = arith.cmpi ne, %1, %c0_i32_0 : i32
    scf.if %2 {
      %cst_13 = arith.constant 0.000000e+00 : f32
      %15 = vector.broadcast %cst_13 : f32 to vector<128x128xf32>
      %c0_14 = arith.constant 0 : index
      %c0_15 = arith.constant 0 : index
      %16 = vector.load %arg7[%c0_14, %c0_15] : memref<128x128xf32, #tpu.memory_space<vmem>>, vector<128x128xf32>
      tpu.vector_store %arg7[%c0_14, %c0_15], %15 {strides = array<i32>} : memref<128x128xf32, #tpu.memory_space<vmem>>, vector<128x128xf32>,
    } else {
    }
    %c0 = arith.constant 0 : index
    %c0_1 = arith.constant 0 : index
    %3 = vector.load %arg3[%c0, %c0_1] : memref<128x128xbf16, #tpu.memory_space<vmem>>, vector<128x128xbf16>
    %c0_2 = arith.constant 0 : index
    %c0_3 = arith.constant 0 : index
    %4 = vector.load %arg4[%c0_2, %c0_3] : memref<128x128xbf16, #tpu.memory_space<vmem>>, vector<128x128xbf16>
    %cst = arith.constant dense<0.000000e+00> : vector<128x128xf32>
    %5 = tpu.matmul %3, %4, %cst {dimension_numbers = #tpu.dot_dimension_numbers<[1], [0], [0], [1], [0, 0, 1, 1], [], []>} : vector<128x128xbf16>, vector<128x128xbf16>, vector<128x128xf32> -> vector<128x128xf32>
    %c0_4 = arith.constant 0 : index
    %c0_5 = arith.constant 0 : index
    %6 = vector.load %arg7[%c0_4, %c0_5] : memref<128x128xf32, #tpu.memory_space<vmem>>, vector<128x128xf32>
    %c0_6 = arith.constant 0 : index
    %c0_7 = arith.constant 0 : index
    %7 = vector.load %arg2[%c0_6, %c0_7] : memref<128x128xbf16, #tpu.memory_space<vmem>>, vector<128x128xbf16>
    %8 = arith.truncf %5 : vector<128x128xf32> to vector<128x128xbf16>
    %cst_8 = arith.constant dense<0.000000e+00> : vector<128x128xf32>
    %9 = tpu.matmul %7, %8, %cst_8 {dimension_numbers = #tpu.dot_dimension_numbers<[1], [0], [0], [1], [0, 0, 1, 1], [], []>} : vector<128x128xbf16>, vector<128x128xbf16>, vector<128x128xf32> -> vector<128x128xf32>
    %10 = arith.addf %6, %9 : vector<128x128xf32>
    %c0_9 = arith.constant 0 : index
    %c0_10 = arith.constant 0 : index
    %11 = vector.load %arg7[%c0_9, %c0_10] : memref<128x128xf32, #tpu.memory_space<vmem>>, vector<128x128xf32>
    tpu.vector_store %arg7[%c0_9, %c0_10], %10 {strides = array<i32>} : memref<128x128xf32, #tpu.memory_space<vmem>>, vector<128x128xf32>,
    %c0_i32_11 = arith.constant 0 : i32
    %12 = arith.cmpi eq, %arg1, %c0_i32_11 : i32
    %13 = arith.extui %12 : i1 to i32
    %c0_i32_12 = arith.constant 0 : i32
    %14 = arith.cmpi ne, %13, %c0_i32_12 : i32
    scf.if %14 {
      %c0_13 = arith.constant 0 : index
      %c0_14 = arith.constant 0 : index
      %15 = vector.load %arg7[%c0_13, %c0_14] : memref<128x128xf32, #tpu.memory_space<vmem>>, vector<128x128xf32>
      %c0_15 = arith.constant 0 : index
      %c0_16 = arith.constant 0 : index
      %16 = vector.load %arg5[%c0_15, %c0_16] : memref<1x128xf32, #tpu.memory_space<vmem>>, vector<1x128xf32>
      %17 = vector.broadcast %16 : vector<1x128xf32> to vector<128x128xf32>
      %18 = arith.addf %15, %17 : vector<128x128xf32>
      %c0_17 = arith.constant 0 : index
      %c0_18 = arith.constant 0 : index
      %19 = vector.load %arg6[%c0_17, %c0_18] : memref<128x128xf32, #tpu.memory_space<vmem>>, vector<128x128xf32>
      tpu.vector_store %arg6[%c0_17, %c0_18], %18 {strides = array<i32>} : memref<128x128xf32, #tpu.memory_space<vmem>>, vector<128x128xf32>,
    } else {
    }
    return
  }
  func.func @transform_0(%arg0: i32, %arg1: i32) -> (i32, i32) {
    %c0_i32 = arith.constant 0 : i32
    return %arg0, %arg1 : i32, i32
  }
  func.func @transform_1(%arg0: i32, %arg1: i32) -> (i32, i32) {
    %c0_i32 = arith.constant 0 : i32
    %c0_i32_0 = arith.constant 0 : i32
    return %arg1, %c0_i32 : i32, i32
  }
  func.func @transform_2(%arg0: i32, %arg1: i32) -> (i32, i32) {
    %c0_i32 = arith.constant 0 : i32
    %c0_i32_0 = arith.constant 0 : i32
    %c0_i32_1 = arith.constant 0 : i32
    return %c0_i32, %c0_i32_0 : i32, i32
  }
  func.func @transform_3(%arg0: i32, %arg1: i32) -> (i32, i32) {
    %c0_i32 = arith.constant 0 : i32
    %c0_i32_0 = arith.constant 0 : i32
    %c0_i32_1 = arith.constant 0 : i32
    return %c0_i32, %c0_i32_0 : i32, i32
  }
  func.func @transform_4(%arg0: i32, %arg1: i32) -> (i32, i32) {
    %c0_i32 = arith.constant 0 : i32
    %c0_i32_0 = arith.constant 0 : i32
    return %arg0, %c0_i32 : i32, i32
  }
}

module attributes {stable_mosaic.version = 11 : i64} {
  func.func @_gcn_layer_kernel(%arg0: i32, %arg1: i32, %arg2: memref<128x128xbf16, #tpu.memory_space<vmem>>, %arg3: memref<128x128xbf16, #tpu.memory_space<vmem>>, %arg4: memref<128x128xbf16, #tpu.memory_space<vmem>>, %arg5: memref<1x128xf32, #tpu.memory_space<vmem>>, %arg6: memref<128x128xbf16, #tpu.memory_space<vmem>>, %arg7: memref<128x128xf32, #tpu.memory_space<vmem>>) attributes {dimension_semantics = [#tpu.dimension_semantics<parallel>, #tpu.dimension_semantics<arbitrary>], iteration_bounds = array<i64: 1, 1>, scalar_prefetch = 0 : i64, scratch_operands = 1 : i64, tpu.core_type = #tpu.core_type<tc>, window_params = [{transform_indices = @transform_0, window_bounds = array<i64: 128, 128>}, {transform_indices = @transform_1, window_bounds = array<i64: 128, 128>}, {pipeline_mode = #tpu.pipeline_mode<synchronous>, transform_indices = @transform_2, window_bounds = array<i64: 128, 128>}, {pipeline_mode = #tpu.pipeline_mode<synchronous>, transform_indices = @transform_3, window_bounds = array<i64: 1, 128>}, {transform_indices = @transform_4, window_bounds = array<i64: 128, 128>}]} {
    %c0_i32 = arith.constant 0 : i32
    %0 = arith.cmpi eq, %arg1, %c0_i32 : i32
    %1 = arith.extui %0 : i1 to i32
    %c0_i32_0 = arith.constant 0 : i32
    %2 = arith.cmpi ne, %1, %c0_i32_0 : i32
    scf.if %2 {
      %cst_13 = arith.constant 0.000000e+00 : f32
      %15 = vector.broadcast %cst_13 : f32 to vector<128x128xf32>
      %c0_14 = arith.constant 0 : index
      %c0_15 = arith.constant 0 : index
      %16 = vector.load %arg7[%c0_14, %c0_15] : memref<128x128xf32, #tpu.memory_space<vmem>>, vector<128x128xf32>
      tpu.vector_store %arg7[%c0_14, %c0_15], %15 {strides = array<i32>} : memref<128x128xf32, #tpu.memory_space<vmem>>, vector<128x128xf32>,
    } else {
    }
    %c0 = arith.constant 0 : index
    %c0_1 = arith.constant 0 : index
    %3 = vector.load %arg3[%c0, %c0_1] : memref<128x128xbf16, #tpu.memory_space<vmem>>, vector<128x128xbf16>
    %c0_2 = arith.constant 0 : index
    %c0_3 = arith.constant 0 : index
    %4 = vector.load %arg4[%c0_2, %c0_3] : memref<128x128xbf16, #tpu.memory_space<vmem>>, vector<128x128xbf16>
    %cst = arith.constant dense<0.000000e+00> : vector<128x128xf32>
    %5 = tpu.matmul %3, %4, %cst {dimension_numbers = #tpu.dot_dimension_numbers<[1], [0], [0], [1], [0, 0, 1, 1], [], []>} : vector<128x128xbf16>, vector<128x128xbf16>, vector<128x128xf32> -> vector<128x128xf32>
    %c0_4 = arith.constant 0 : index
    %c0_5 = arith.constant 0 : index
    %6 = vector.load %arg7[%c0_4, %c0_5] : memref<128x128xf32, #tpu.memory_space<vmem>>, vector<128x128xf32>
    %c0_6 = arith.constant 0 : index
    %c0_7 = arith.constant 0 : index
    %7 = vector.load %arg2[%c0_6, %c0_7] : memref<128x128xbf16, #tpu.memory_space<vmem>>, vector<128x128xbf16>
    %8 = arith.truncf %5 : vector<128x128xf32> to vector<128x128xbf16>
    %cst_8 = arith.constant dense<0.000000e+00> : vector<128x128xf32>
    %9 = tpu.matmul %7, %8, %cst_8 {dimension_numbers = #tpu.dot_dimension_numbers<[1], [0], [0], [1], [0, 0, 1, 1], [], []>} : vector<128x128xbf16>, vector<128x128xbf16>, vector<128x128xf32> -> vector<128x128xf32>
    %10 = arith.addf %6, %9 : vector<128x128xf32>
    %c0_9 = arith.constant 0 : index
    %c0_10 = arith.constant 0 : index
    %11 = vector.load %arg7[%c0_9, %c0_10] : memref<128x128xf32, #tpu.memory_space<vmem>>, vector<128x128xf32>
    tpu.vector_store %arg7[%c0_9, %c0_10], %10 {strides = array<i32>} : memref<128x128xf32, #tpu.memory_space<vmem>>, vector<128x128xf32>,
    %c0_i32_11 = arith.constant 0 : i32
    %12 = arith.cmpi eq, %arg1, %c0_i32_11 : i32
    %13 = arith.extui %12 : i1 to i32
    %c0_i32_12 = arith.constant 0 : i32
    %14 = arith.cmpi ne, %13, %c0_i32_12 : i32
    scf.if %14 {
      %c0_13 = arith.constant 0 : index
      %c0_14 = arith.constant 0 : index
      %15 = vector.load %arg7[%c0_13, %c0_14] : memref<128x128xf32, #tpu.memory_space<vmem>>, vector<128x128xf32>
      %c0_15 = arith.constant 0 : index
      %c0_16 = arith.constant 0 : index
      %16 = vector.load %arg5[%c0_15, %c0_16] : memref<1x128xf32, #tpu.memory_space<vmem>>, vector<1x128xf32>
      %17 = vector.broadcast %16 : vector<1x128xf32> to vector<128x128xf32>
      %18 = arith.addf %15, %17 : vector<128x128xf32>
      %cst_17 = arith.constant 0.000000e+00 : f32
      %19 = vector.broadcast %cst_17 : f32 to vector<128x128xf32>
      %20 = arith.maximumf %18, %19 : vector<128x128xf32>
      %21 = arith.truncf %20 : vector<128x128xf32> to vector<128x128xbf16>
      %c0_18 = arith.constant 0 : index
      %c0_19 = arith.constant 0 : index
      %22 = vector.load %arg6[%c0_18, %c0_19] : memref<128x128xbf16, #tpu.memory_space<vmem>>, vector<128x128xbf16>
      tpu.vector_store %arg6[%c0_18, %c0_19], %21 {strides = array<i32>} : memref<128x128xbf16, #tpu.memory_space<vmem>>, vector<128x128xbf16>,
    } else {
    }
    return
  }
  func.func @transform_0(%arg0: i32, %arg1: i32) -> (i32, i32) {
    %c0_i32 = arith.constant 0 : i32
    return %arg0, %arg1 : i32, i32
  }
  func.func @transform_1(%arg0: i32, %arg1: i32) -> (i32, i32) {
    %c0_i32 = arith.constant 0 : i32
    %c0_i32_0 = arith.constant 0 : i32
    return %arg1, %c0_i32 : i32, i32
  }
  func.func @transform_2(%arg0: i32, %arg1: i32) -> (i32, i32) {
    %c0_i32 = arith.constant 0 : i32
    %c0_i32_0 = arith.constant 0 : i32
    %c0_i32_1 = arith.constant 0 : i32
    return %c0_i32, %c0_i32_0 : i32, i32
  }
  func.func @transform_3(%arg0: i32, %arg1: i32) -> (i32, i32) {
    %c0_i32 = arith.constant 0 : i32
    %c0_i32_0 = arith.constant 0 : i32
    %c0_i32_1 = arith.constant 0 : i32
    return %c0_i32, %c0_i32_0 : i32, i32
  }
  func.func @transform_4(%arg0: i32, %arg1: i32) -> (i32, i32) {
    %c0_i32 = arith.constant 0 : i32
    %c0_i32_0 = arith.constant 0 : i32
    return %arg0, %c0_i32 : i32, i32
  }
}

</mosaic_0001>

<bundles_post_ra>
// kernel: _lambda_.3
= control target key start
LH: loop header
LB: loop body
LE: loop exit
PB: predicated region body
PF: predicated region fallthrough
CT: control target
= control target key end

     0   :  { %s727_s2 = inlined_call_operand.vmem [shape: bf16[128,128], index: 2, kind: input, shape index: {}]   ;;  %s728_s1 = inlined_call_operand.vmem [shape: bf16[128,128], index: 1, kind: input, shape index: {}]   ;;  %s729_s3 = inlined_call_operand.vmem [shape: f32[1,128], index: 3, kind: input, shape index: {}]   ;;  %s730_s0 = inlined_call_operand.vmem [shape: bf16[128,128], index: 0, kind: input, shape index: {}]   ;;  %s731_s4 = inlined_call_operand.vmem [shape: f32[128,128], index: 4, kind: output, shape index: {}]  }
   0x1   :  { %v553_v0 = vld [vmem:[%s727_s2 + $0x38] sm:$0xff]  ;;  %v552_v1 = vld [vmem:[%s727_s2 + $0x30] sm:$0xff]  ;;  %v551_v2 = vld [vmem:[%s727_s2 + $0x28] sm:$0xff] }
   0x2   :  { %562 = vmatpush.bf16.msra.mxu2 %v553_v0  ;;  %165 = vmatpush.bf16.msra.mxu0 %v553_v0  ;;  %v550_v3 = vld [vmem:[%s727_s2 + $0x20] sm:$0xff]  ;;  %v549_v4 = vld [vmem:[%s727_s2 + $0x18] sm:$0xff]  ;;  %v548_v5 = vld [vmem:[%s727_s2 + $0x10] sm:$0xff] }
   0x3   :  { %v547_v6 = vld [vmem:[%s727_s2 + $0x8] sm:$0xff]  ;;  %v546_v7 = vld [vmem:[%s727_s2] sm:$0xff]  ;;  %v544_v12 = vld [vmem:[%s728_s1 + $0x30] sm:$0xff] }
   0x4   :  { %v542_v8 = vld [vmem:[%s728_s1 + $0x20] sm:$0xff]  ;;  %v543_v10 = vld [vmem:[%s728_s1 + $0x28] sm:$0xff]  ;;  %v540_v13 = vld [vmem:[%s728_s1 + $0x10] sm:$0xff] }
   0x5   :  { %v538_v9 = vld [vmem:[%s728_s1] sm:$0xff]  ;;  %v539_v11 = vld [vmem:[%s728_s1 + $0x8] sm:$0xff]  ;;  %v545_v14 = vld [vmem:[%s728_s1 + $0x38] sm:$0xff] }
   0x6   :  { %563 = vmatpush.bf16.msra.mxu2 %v552_v1  ;;  %166 = vmatpush.bf16.msra.mxu0 %v552_v1  ;;  %v541_v15 = vld [vmem:[%s728_s1 + $0x18] sm:$0xff]  ;;  %v554_v40 = vld [vmem:[%s730_s0] sm:$0xff]  ;;  %v555_v42 = vld [vmem:[%s730_s0 + $0x8] sm:$0xff] }
   0x7   :  { %v558_v41 = vld [vmem:[%s730_s0 + $0x20] sm:$0xff]  ;;  %v559_v43 = vld [vmem:[%s730_s0 + $0x28] sm:$0xff]  ;;  %v556_v44 = vld [vmem:[%s730_s0 + $0x10] sm:$0xff] }
   0x8   :  { %v560_v45 = vld [vmem:[%s730_s0 + $0x30] sm:$0xff]  ;;  %v557_v46 = vld [vmem:[%s730_s0 + $0x18] sm:$0xff]  ;;  %v578_v48 = vld [vmem:[%s729_s3] ss:$0 sm:$0xff] }
   0x9   :  { %v561_v47 = vld [vmem:[%s730_s0 + $0x38] sm:$0xff] }
   0xa   :  { %564 = vmatpush.bf16.msra.mxu2 %v551_v2  ;;  %167 = vmatpush.bf16.msra.mxu0 %v551_v2 }
   0xe   :  { %565 = vmatpush.bf16.msra.mxu2 %v550_v3  ;;  %168 = vmatpush.bf16.msra.mxu0 %v550_v3 }
  0x12   :  { %566 = vmatpush.bf16.msra.mxu2 %v549_v4  ;;  %169 = vmatpush.bf16.msra.mxu0 %v549_v4 }
  0x16   :  { %567 = vmatpush.bf16.msra.mxu2 %v548_v5  ;;  %170 = vmatpush.bf16.msra.mxu0 %v548_v5 }
  0x1a   :  { %568 = vmatpush.bf16.msra.mxu2 %v547_v6  ;;  %171 = vmatpush.bf16.msra.mxu0 %v547_v6 }
  0x1e   :  { %569 = vmatpush.bf16.msra.mxu2 %v546_v7  ;;  %172 = vmatpush.bf16.msra.mxu0 %v546_v7 }
  0x21   :  { %193 = vmatmul.bf16.vlgmr.msra.gmra.mxu2 %v542_v8  ;;  %173 = vmatmul.bf16.vlgmr.msra.gmra.mxu0 %v538_v9 }
  0x31   :  { %198 = vmatmul.bf16.gmra.mxu2 %v543_v10  ;;  %178 = vmatmul.bf16.gmra.mxu0 %v539_v11 }
  0x41   :  { %203 = vmatmul.bf16.gmra.mxu2 %v544_v12  ;;  %183 = vmatmul.bf16.gmra.mxu0 %v540_v13 }
  0x51   :  { %208 = vmatmul.bf16.gmra.mxu2 %v545_v14  ;;  %188 = vmatmul.bf16.gmra.mxu0 %v541_v15 }
  0x9e   :  { %v174_v17 = vpop.f32.mrf.mxu0 }
  0xa4   :  { %v194_v16 = vpop.f32.mrf.mxu2 }
  0xa6   :  { %v176_v19 = vpop.f32.mrf.mxu0 }
  0xa7   :  { %v246_v39 = vpack.c.bf16 %v176_v19, %v174_v17 }
  0xac   :  { %v196_v18 = vpop.f32.mrf.mxu2 }
  0xad   :  { %v250_v34 = vpack.c.bf16 %v196_v18, %v194_v16 }
  0xae   :  { %v179_v21 = vpop.f32.mrf.mxu0 }
  0xb4   :  { %v199_v20 = vpop.f32.mrf.mxu2 }
  0xb6   :  { %v181_v23 = vpop.f32.mrf.mxu0 }
  0xb7   :  { %v247_v38 = vpack.c.bf16 %v181_v23, %v179_v21 }
  0xbc   :  { %v201_v22 = vpop.f32.mrf.mxu2 }
  0xbd   :  { %v251_v33 = vpack.c.bf16 %v201_v22, %v199_v20 }
  0xbe   :  { %v184_v25 = vpop.f32.mrf.mxu0 }
  0xc4   :  { %v204_v24 = vpop.f32.mrf.mxu2 }
  0xc6   :  { %v186_v28 = vpop.f32.mrf.mxu0 }
  0xc7   :  { %v248_v37 = vpack.c.bf16 %v186_v28, %v184_v25 }
  0xcc   :  { %v206_v26 = vpop.f32.mrf.mxu2 }
  0xcd   :  { %v252_v32 = vpack.c.bf16 %v206_v26, %v204_v24 }
  0xce   :  { %v189_v31 = vpop.f32.mrf.mxu0 }
  0xd4   :  { %v209_v27 = vpop.f32.mrf.mxu2 }
  0xd6   :  { %v191_v35 = vpop.f32.mrf.mxu0 }
  0xd7   :  { %v249_v36 = vpack.c.bf16 %v191_v35, %v189_v31 }
  0xdc   :  { %v211_v29 = vpop.f32.mrf.mxu2 }
  0xdd   :  { %v253_v30 = vpack.c.bf16 %v211_v29, %v209_v27 }
  0xdf   :  { %302 = vmatpush.bf16.msra.mxu1 %v253_v30  ;;  %570 = vmatpush.bf16.msra.mxu3 %v253_v30 }
  0xe3   :  { %303 = vmatpush.bf16.msra.mxu1 %v252_v32  ;;  %571 = vmatpush.bf16.msra.mxu3 %v252_v32 }
  0xe7   :  { %304 = vmatpush.bf16.msra.mxu1 %v251_v33  ;;  %572 = vmatpush.bf16.msra.mxu3 %v251_v33 }
  0xeb   :  { %305 = vmatpush.bf16.msra.mxu1 %v250_v34  ;;  %573 = vmatpush.bf16.msra.mxu3 %v250_v34 }
  0xef   :  { %306 = vmatpush.bf16.msra.mxu1 %v249_v36  ;;  %574 = vmatpush.bf16.msra.mxu3 %v249_v36 }
  0xf3   :  { %307 = vmatpush.bf16.msra.mxu1 %v248_v37  ;;  %575 = vmatpush.bf16.msra.mxu3 %v248_v37 }
  0xf7   :  { %308 = vmatpush.bf16.msra.mxu1 %v247_v38  ;;  %576 = vmatpush.bf16.msra.mxu3 %v247_v38 }
  0xfb   :  { %309 = vmatpush.bf16.msra.mxu1 %v246_v39  ;;  %577 = vmatpush.bf16.msra.mxu3 %v246_v39 }
  0xfe   :  { %310 = vmatmul.bf16.vlgmr.msra.gmra.mxu1 %v554_v40  ;;  %330 = vmatmul.bf16.vlgmr.msra.gmra.mxu3 %v558_v41 }
 0x10e   :  { %315 = vmatmul.bf16.gmra.mxu1 %v555_v42  ;;  %335 = vmatmul.bf16.gmra.mxu3 %v559_v43 }
 0x11e   :  { %320 = vmatmul.bf16.gmra.mxu1 %v556_v44  ;;  %340 = vmatmul.bf16.gmra.mxu3 %v560_v45 }
 0x12e   :  { %325 = vmatmul.bf16.gmra.mxu1 %v557_v46  ;;  %345 = vmatmul.bf16.gmra.mxu3 %v561_v47 }
 0x17b   :  { %v311_v49 = vpop.f32.mrf.mxu1 }
 0x17c   :  { %v406_v50 = vadd.f32 %v578_v48, %v311_v49 }
 0x17e   :  { %422 = vst [vmem:[%s731_s4] sm:$0xff] %v406_v50 }
 0x181   :  { %v331_v51 = vpop.f32.mrf.mxu3 }
 0x182   :  { %v414_v52 = vadd.f32 %v578_v48, %v331_v51 }
 0x183   :  { %v313_v53 = vpop.f32.mrf.mxu1 }
 0x184   :  { %430 = vst [vmem:[%s731_s4 + $0x40] sm:$0xff] %v414_v52  ;;  %v407_v54 = vadd.f32 %v578_v48, %v313_v53 }
 0x186   :  { %423 = vst [vmem:[%s731_s4 + $0x8] sm:$0xff] %v407_v54 }
 0x189   :  { %v333_v55 = vpop.f32.mrf.mxu3 }
 0x18a   :  { %v415_v56 = vadd.f32 %v578_v48, %v333_v55 }
 0x18b   :  { %v316_v57 = vpop.f32.mrf.mxu1 }
 0x18c   :  { %431 = vst [vmem:[%s731_s4 + $0x48] sm:$0xff] %v415_v56  ;;  %v408_v58 = vadd.f32 %v578_v48, %v316_v57 }
 0x18e   :  { %424 = vst [vmem:[%s731_s4 + $0x10] sm:$0xff] %v408_v58 }
 0x191   :  { %v336_v59 = vpop.f32.mrf.mxu3 }
 0x192   :  { %v416_v60 = vadd.f32 %v578_v48, %v336_v59 }
 0x193   :  { %v318_v61 = vpop.f32.mrf.mxu1 }
 0x194   :  { %432 = vst [vmem:[%s731_s4 + $0x50] sm:$0xff] %v416_v60  ;;  %v409_v62 = vadd.f32 %v578_v48, %v318_v61 }
 0x196   :  { %425 = vst [vmem:[%s731_s4 + $0x18] sm:$0xff] %v409_v62 }
 0x199   :  { %v338_v63 = vpop.f32.mrf.mxu3 }
 0x19a   :  { %v417_v0 = vadd.f32 %v578_v48, %v338_v63 }
 0x19b   :  { %v321_v1 = vpop.f32.mrf.mxu1 }
 0x19c   :  { %433 = vst [vmem:[%s731_s4 + $0x58] sm:$0xff] %v417_v0  ;;  %v410_v2 = vadd.f32 %v578_v48, %v321_v1 }
 0x19e   :  { %426 = vst [vmem:[%s731_s4 + $0x20] sm:$0xff] %v410_v2 }
 0x1a1   :  { %v341_v3 = vpop.f32.mrf.mxu3 }
 0x1a2   :  { %v418_v4 = vadd.f32 %v578_v48, %v341_v3 }
 0x1a3   :  { %v323_v5 = vpop.f32.mrf.mxu1 }
 0x1a4   :  { %434 = vst [vmem:[%s731_s4 + $0x60] sm:$0xff] %v418_v4  ;;  %v411_v6 = vadd.f32 %v578_v48, %v323_v5 }
 0x1a6   :  { %427 = vst [vmem:[%s731_s4 + $0x28] sm:$0xff] %v411_v6 }
 0x1a9   :  { %v343_v7 = vpop.f32.mrf.mxu3 }
 0x1aa   :  { %v419_v8 = vadd.f32 %v578_v48, %v343_v7 }
 0x1ab   :  { %v326_v9 = vpop.f32.mrf.mxu1 }
 0x1ac   :  { %435 = vst [vmem:[%s731_s4 + $0x68] sm:$0xff] %v419_v8  ;;  %v412_v10 = vadd.f32 %v578_v48, %v326_v9 }
 0x1ae   :  { %428 = vst [vmem:[%s731_s4 + $0x30] sm:$0xff] %v412_v10 }
 0x1b1   :  { %v346_v11 = vpop.f32.mrf.mxu3 }
 0x1b2   :  { %v420_v12 = vadd.f32 %v578_v48, %v346_v11 }
 0x1b3   :  { %v328_v13 = vpop.f32.mrf.mxu1 }
 0x1b4   :  { %436 = vst [vmem:[%s731_s4 + $0x70] sm:$0xff] %v420_v12  ;;  %v413_v14 = vadd.f32 %v578_v48, %v328_v13 }
 0x1b6   :  { %429 = vst [vmem:[%s731_s4 + $0x38] sm:$0xff] %v413_v14 }
 0x1b9   :  { %v348_v15 = vpop.f32.mrf.mxu3 }
 0x1ba   :  { %v421_v16 = vadd.f32 %v578_v48, %v348_v15 }
 0x1bc   :  { %437 = vst [vmem:[%s731_s4 + $0x78] sm:$0xff] %v421_v16 }

// kernel: _lambda_.2
= control target key start
LH: loop header
LB: loop body
LE: loop exit
PB: predicated region body
PF: predicated region fallthrough
CT: control target
= control target key end

     0   :  { %s782_s2 = inlined_call_operand.vmem [shape: bf16[128,128], index: 2, kind: input, shape index: {}]   ;;  %s783_s1 = inlined_call_operand.vmem [shape: bf16[128,128], index: 1, kind: input, shape index: {}]   ;;  %s784_s3 = inlined_call_operand.vmem [shape: f32[1,128], index: 3, kind: input, shape index: {}]   ;;  %s785_s0 = inlined_call_operand.vmem [shape: bf16[128,128], index: 0, kind: input, shape index: {}]   ;;  %s786_s4 = inlined_call_operand.vmem [shape: bf16[128,128], index: 4, kind: output, shape index: {}]  }
   0x1   :  { %v585_v0 = vld [vmem:[%s782_s2 + $0x38] sm:$0xff]  ;;  %v584_v1 = vld [vmem:[%s782_s2 + $0x30] sm:$0xff]  ;;  %v583_v2 = vld [vmem:[%s782_s2 + $0x28] sm:$0xff] }
   0x2   :  { %641 = vmatpush.bf16.msra.mxu2 %v585_v0  ;;  %165 = vmatpush.bf16.msra.mxu0 %v585_v0  ;;  %v582_v3 = vld [vmem:[%s782_s2 + $0x20] sm:$0xff]  ;;  %v581_v4 = vld [vmem:[%s782_s2 + $0x18] sm:$0xff]  ;;  %v580_v5 = vld [vmem:[%s782_s2 + $0x10] sm:$0xff] }
   0x3   :  { %v579_v6 = vld [vmem:[%s782_s2 + $0x8] sm:$0xff]  ;;  %v578_v7 = vld [vmem:[%s782_s2] sm:$0xff]  ;;  %v576_v12 = vld [vmem:[%s783_s1 + $0x30] sm:$0xff] }
   0x4   :  { %v574_v8 = vld [vmem:[%s783_s1 + $0x20] sm:$0xff]  ;;  %v575_v10 = vld [vmem:[%s783_s1 + $0x28] sm:$0xff]  ;;  %v572_v13 = vld [vmem:[%s783_s1 + $0x10] sm:$0xff] }
   0x5   :  { %v570_v9 = vld [vmem:[%s783_s1] sm:$0xff]  ;;  %v571_v11 = vld [vmem:[%s783_s1 + $0x8] sm:$0xff]  ;;  %v577_v14 = vld [vmem:[%s783_s1 + $0x38] sm:$0xff] }
   0x6   :  { %642 = vmatpush.bf16.msra.mxu2 %v584_v1  ;;  %166 = vmatpush.bf16.msra.mxu0 %v584_v1  ;;  %v573_v15 = vld [vmem:[%s783_s1 + $0x18] sm:$0xff]  ;;  %v586_v40 = vld [vmem:[%s785_s0] sm:$0xff]  ;;  %v587_v42 = vld [vmem:[%s785_s0 + $0x8] sm:$0xff] }
   0x7   :  { %v590_v41 = vld [vmem:[%s785_s0 + $0x20] sm:$0xff]  ;;  %v591_v43 = vld [vmem:[%s785_s0 + $0x28] sm:$0xff]  ;;  %v588_v44 = vld [vmem:[%s785_s0 + $0x10] sm:$0xff] }
   0x8   :  { %v592_v45 = vld [vmem:[%s785_s0 + $0x30] sm:$0xff]  ;;  %v589_v46 = vld [vmem:[%s785_s0 + $0x18] sm:$0xff]  ;;  %v657_v49 = vld [vmem:[%s784_s3] ss:$0 sm:$0xff] }
   0x9   :  { %v593_v47 = vld [vmem:[%s785_s0 + $0x38] sm:$0xff] }
   0xa   :  { %643 = vmatpush.bf16.msra.mxu2 %v583_v2  ;;  %167 = vmatpush.bf16.msra.mxu0 %v583_v2 }
   0xe   :  { %644 = vmatpush.bf16.msra.mxu2 %v582_v3  ;;  %168 = vmatpush.bf16.msra.mxu0 %v582_v3 }
  0x12   :  { %645 = vmatpush.bf16.msra.mxu2 %v581_v4  ;;  %169 = vmatpush.bf16.msra.mxu0 %v581_v4 }
  0x16   :  { %646 = vmatpush.bf16.msra.mxu2 %v580_v5  ;;  %170 = vmatpush.bf16.msra.mxu0 %v580_v5 }
  0x1a   :  { %647 = vmatpush.bf16.msra.mxu2 %v579_v6  ;;  %171 = vmatpush.bf16.msra.mxu0 %v579_v6 }
  0x1e   :  { %648 = vmatpush.bf16.msra.mxu2 %v578_v7  ;;  %172 = vmatpush.bf16.msra.mxu0 %v578_v7 }
  0x21   :  { %193 = vmatmul.bf16.vlgmr.msra.gmra.mxu2 %v574_v8  ;;  %173 = vmatmul.bf16.vlgmr.msra.gmra.mxu0 %v570_v9 }
  0x31   :  { %198 = vmatmul.bf16.gmra.mxu2 %v575_v10  ;;  %178 = vmatmul.bf16.gmra.mxu0 %v571_v11 }
  0x41   :  { %203 = vmatmul.bf16.gmra.mxu2 %v576_v12  ;;  %183 = vmatmul.bf16.gmra.mxu0 %v572_v13 }
  0x51   :  { %208 = vmatmul.bf16.gmra.mxu2 %v577_v14  ;;  %188 = vmatmul.bf16.gmra.mxu0 %v573_v15 }
  0x9e   :  { %v174_v17 = vpop.f32.mrf.mxu0 }
  0xa4   :  { %v194_v16 = vpop.f32.mrf.mxu2 }
  0xa6   :  { %v176_v19 = vpop.f32.mrf.mxu0 }
  0xa7   :  { %v246_v39 = vpack.c.bf16 %v176_v19, %v174_v17 }
  0xac   :  { %v196_v18 = vpop.f32.mrf.mxu2 }
  0xad   :  { %v250_v34 = vpack.c.bf16 %v196_v18, %v194_v16 }
  0xae   :  { %v179_v21 = vpop.f32.mrf.mxu0 }
  0xb4   :  { %v199_v20 = vpop.f32.mrf.mxu2 }
  0xb6   :  { %v181_v23 = vpop.f32.mrf.mxu0 }
  0xb7   :  { %v247_v38 = vpack.c.bf16 %v181_v23, %v179_v21 }
  0xbc   :  { %v201_v22 = vpop.f32.mrf.mxu2 }
  0xbd   :  { %v251_v33 = vpack.c.bf16 %v201_v22, %v199_v20 }
  0xbe   :  { %v184_v25 = vpop.f32.mrf.mxu0 }
  0xc4   :  { %v204_v24 = vpop.f32.mrf.mxu2 }
  0xc6   :  { %v186_v28 = vpop.f32.mrf.mxu0 }
  0xc7   :  { %v248_v37 = vpack.c.bf16 %v186_v28, %v184_v25 }
  0xcc   :  { %v206_v26 = vpop.f32.mrf.mxu2 }
  0xcd   :  { %v252_v32 = vpack.c.bf16 %v206_v26, %v204_v24 }
  0xce   :  { %v189_v31 = vpop.f32.mrf.mxu0 }
  0xd4   :  { %v209_v27 = vpop.f32.mrf.mxu2 }
  0xd6   :  { %v191_v35 = vpop.f32.mrf.mxu0 }
  0xd7   :  { %v249_v36 = vpack.c.bf16 %v191_v35, %v189_v31 }
  0xdc   :  { %v211_v29 = vpop.f32.mrf.mxu2 }
  0xdd   :  { %v253_v30 = vpack.c.bf16 %v211_v29, %v209_v27 }
  0xdf   :  { %302 = vmatpush.bf16.msra.mxu1 %v253_v30  ;;  %649 = vmatpush.bf16.msra.mxu3 %v253_v30 }
  0xe3   :  { %303 = vmatpush.bf16.msra.mxu1 %v252_v32  ;;  %650 = vmatpush.bf16.msra.mxu3 %v252_v32 }
  0xe7   :  { %304 = vmatpush.bf16.msra.mxu1 %v251_v33  ;;  %651 = vmatpush.bf16.msra.mxu3 %v251_v33 }
  0xeb   :  { %305 = vmatpush.bf16.msra.mxu1 %v250_v34  ;;  %652 = vmatpush.bf16.msra.mxu3 %v250_v34 }
  0xef   :  { %306 = vmatpush.bf16.msra.mxu1 %v249_v36  ;;  %653 = vmatpush.bf16.msra.mxu3 %v249_v36 }
  0xf3   :  { %307 = vmatpush.bf16.msra.mxu1 %v248_v37  ;;  %654 = vmatpush.bf16.msra.mxu3 %v248_v37 }
  0xf7   :  { %308 = vmatpush.bf16.msra.mxu1 %v247_v38  ;;  %655 = vmatpush.bf16.msra.mxu3 %v247_v38 }
  0xfb   :  { %309 = vmatpush.bf16.msra.mxu1 %v246_v39  ;;  %656 = vmatpush.bf16.msra.mxu3 %v246_v39 }
  0xfe   :  { %310 = vmatmul.bf16.vlgmr.msra.gmra.mxu1 %v586_v40  ;;  %330 = vmatmul.bf16.vlgmr.msra.gmra.mxu3 %v590_v41 }
 0x10e   :  { %315 = vmatmul.bf16.gmra.mxu1 %v587_v42  ;;  %335 = vmatmul.bf16.gmra.mxu3 %v591_v43 }
 0x11e   :  { %320 = vmatmul.bf16.gmra.mxu1 %v588_v44  ;;  %340 = vmatmul.bf16.gmra.mxu3 %v592_v45 }
 0x12e   :  { %325 = vmatmul.bf16.gmra.mxu1 %v589_v46  ;;  %345 = vmatmul.bf16.gmra.mxu3 %v593_v47 }
 0x17b   :  { %v311_v48 = vpop.f32.mrf.mxu1 }
 0x17c   :  { %v406_v51 = vadd.f32 %v657_v49, %v311_v48 }
 0x17e   :  { %v422_v54 = vmax.f32 %v406_v51, 0.0 }
 0x181   :  { %v331_v50 = vpop.f32.mrf.mxu3 }
 0x182   :  { %v414_v56 = vadd.f32 %v657_v49, %v331_v50 }
 0x183   :  { %v313_v52 = vpop.f32.mrf.mxu1 }
 0x184   :  { %v407_v53 = vadd.f32 %v657_v49, %v313_v52  ;;  %v430_v61 = vmax.f32 %v414_v56, 0.0 }
 0x186   :  { %v423_v55 = vmax.f32 %v407_v53, 0.0 }
 0x188   :  { %v597_v57 = vpack.c.bf16 %v423_v55, %v422_v54 }
 0x189   :  { %v333_v58 = vpop.f32.mrf.mxu3 }
 0x18a   :  { %598 = vst [vmem:[%s786_s4] sm:$0xff] %v597_v57   ;;  %v415_v59 = vadd.f32 %v657_v49, %v333_v58 }
 0x18b   :  { %v316_v60 = vpop.f32.mrf.mxu1 }
 0x18c   :  { %v431_v62 = vmax.f32 %v415_v59, 0.0  ;;  %v408_v1 = vadd.f32 %v657_v49, %v316_v60 }
 0x18e   :  { %v617_v63 = vpack.c.bf16 %v431_v62, %v430_v61  ;;  %v424_v4 = vmax.f32 %v408_v1, 0.0 }
 0x190   :  { %637 = vst [vmem:[%s786_s4 + $0x20] sm:$0xff] %v617_v63  }
 0x191   :  { %v336_v0 = vpop.f32.mrf.mxu3 }
 0x192   :  { %v416_v6 = vadd.f32 %v657_v49, %v336_v0 }
 0x193   :  { %v318_v2 = vpop.f32.mrf.mxu1 }
 0x194   :  { %v409_v3 = vadd.f32 %v657_v49, %v318_v2  ;;  %v432_v11 = vmax.f32 %v416_v6, 0.0 }
 0x196   :  { %v425_v5 = vmax.f32 %v409_v3, 0.0 }
 0x198   :  { %v602_v7 = vpack.c.bf16 %v425_v5, %v424_v4 }
 0x199   :  { %v338_v8 = vpop.f32.mrf.mxu3 }
 0x19a   :  { %634 = vst [vmem:[%s786_s4 + $0x8] sm:$0xff] %v602_v7   ;;  %v417_v9 = vadd.f32 %v657_v49, %v338_v8 }
 0x19b   :  { %v321_v10 = vpop.f32.mrf.mxu1 }
 0x19c   :  { %v433_v12 = vmax.f32 %v417_v9, 0.0  ;;  %v410_v15 = vadd.f32 %v657_v49, %v321_v10 }
 0x19e   :  { %v622_v13 = vpack.c.bf16 %v433_v12, %v432_v11  ;;  %v426_v18 = vmax.f32 %v410_v15, 0.0 }
 0x1a0   :  { %638 = vst [vmem:[%s786_s4 + $0x28] sm:$0xff] %v622_v13  }
 0x1a1   :  { %v341_v14 = vpop.f32.mrf.mxu3 }
 0x1a2   :  { %v418_v20 = vadd.f32 %v657_v49, %v341_v14 }
 0x1a3   :  { %v323_v16 = vpop.f32.mrf.mxu1 }
 0x1a4   :  { %v411_v17 = vadd.f32 %v657_v49, %v323_v16  ;;  %v434_v25 = vmax.f32 %v418_v20, 0.0 }
 0x1a6   :  { %v427_v19 = vmax.f32 %v411_v17, 0.0 }
 0x1a8   :  { %v607_v21 = vpack.c.bf16 %v427_v19, %v426_v18 }
 0x1a9   :  { %v343_v22 = vpop.f32.mrf.mxu3 }
 0x1aa   :  { %635 = vst [vmem:[%s786_s4 + $0x10] sm:$0xff] %v607_v21   ;;  %v419_v23 = vadd.f32 %v657_v49, %v343_v22 }
 0x1ab   :  { %v326_v24 = vpop.f32.mrf.mxu1 }
 0x1ac   :  { %v435_v26 = vmax.f32 %v419_v23, 0.0  ;;  %v412_v29 = vadd.f32 %v657_v49, %v326_v24 }
 0x1ae   :  { %v627_v27 = vpack.c.bf16 %v435_v26, %v434_v25  ;;  %v428_v32 = vmax.f32 %v412_v29, 0.0 }
 0x1b0   :  { %639 = vst [vmem:[%s786_s4 + $0x30] sm:$0xff] %v627_v27  }
 0x1b1   :  { %v346_v28 = vpop.f32.mrf.mxu3 }
 0x1b2   :  { %v420_v34 = vadd.f32 %v657_v49, %v346_v28 }
 0x1b3   :  { %v328_v30 = vpop.f32.mrf.mxu1 }
 0x1b4   :  { %v413_v31 = vadd.f32 %v657_v49, %v328_v30  ;;  %v436_v38 = vmax.f32 %v420_v34, 0.0 }
 0x1b6   :  { %v429_v33 = vmax.f32 %v413_v31, 0.0 }
 0x1b8   :  { %v612_v35 = vpack.c.bf16 %v429_v33, %v428_v32 }
 0x1b9   :  { %v348_v36 = vpop.f32.mrf.mxu3 }
 0x1ba   :  { %636 = vst [vmem:[%s786_s4 + $0x18] sm:$0xff] %v612_v35   ;;  %v421_v37 = vadd.f32 %v657_v49, %v348_v36 }
 0x1bc   :  { %v437_v39 = vmax.f32 %v421_v37, 0.0 }
 0x1be   :  { %v632_v40 = vpack.c.bf16 %v437_v39, %v436_v38 }
 0x1c0   :  { %640 = vst [vmem:[%s786_s4 + $0x38] sm:$0xff] %v632_v40  }

</bundles_post_ra>
